<compile_context>
chip_gen: v7x
topology: tpu7x:2x2x1
jax: 0.10.0
libtpu: 0.0.40
codegen_flags: <defaults>
</compile_context>

<pallas_src>
import functools

import numpy as np
import jax
import jax.numpy as jnp
from jax import lax
from jax.experimental import pallas as pl
from jax.experimental.pallas import tpu as pltpu

NUM_AA_TYPES = 23
MSA_FEAT_DIM = NUM_AA_TYPES + 1      # one-hot(aatype) + deletion value
RELPOS_BINS = 65                     # one_hot(clip(i - j, -32, 32))
NUM_DIST_BINS = 16                   # recycling distogram bins
NUM_TM_BINS = 16                     # tm_logits bins
NUM_ATOMS = 14                       # "n14-tf" atom format (AtomMapper output)
DIST_MIN = 3.25                      # recycling-embedder bin boundaries (A)
DIST_MAX = 20.75
PACK_W = 128                         # lane-dense packed slab width


def _layer_norm(x, eps=1e-5):
    mu = jnp.mean(x, axis=-1, keepdims=True)
    var = jnp.mean((x - mu) ** 2, axis=-1, keepdims=True)
    return (x - mu) * lax.rsqrt(var + eps)


def _vmem_limit_bytes():
    """Explicit scoped-VMEM limit with headroom for Mosaic internal scratch."""
    cap = None
    try:
        cap = int(pltpu.get_tpu_info().vmem_capacity_bytes)
    except Exception:
        cap = None
    if not cap:
        return 56 * 1024 * 1024            # safe on v5e / v6e / v7x
    return min(int(cap * 0.85), 112 * 1024 * 1024)


# --------------------------------------------------------------------------
# Kernel A: MSA / structure path, fused over recycles (grid = (R+1,))
# --------------------------------------------------------------------------
def _msa_recycle_kernel(
    m0_ref, w_mf_ref, b_m_ref, w_sx_ref, g_m_ref, be_m_ref,       # inputs
    m0_out_ref, xm_out_ref, hp_out_ref,                            # outputs
    m1_prev, casq_prev,                                            # scratch
    *, n_seq, c_z,
):
    f32, bf16 = jnp.float32, jnp.bfloat16
    n_res, c_m = m0_ref.shape
    r = pl.program_id(0)

    @pl.when(r == 0)
    def _init():
        m1_prev[...] = jnp.zeros_like(m1_prev)
        casq_prev[...] = jnp.zeros_like(casq_prev)

    # recycling embedder (first-sequence rows only; other rows are invariant
    # and handled once, JAX-side)
    m1 = _layer_norm(m1_prev[...]) * g_m_ref[...] + be_m_ref[...]
    m_row0 = m0_ref[...] + m1

    # one fused bf16 MXU pass: [t | opm_a | opm_b | single] (128 lanes)
    h = jnp.dot(m_row0.astype(bf16), w_mf_ref[...], preferred_element_type=f32)
    t = h[:, :c_m]
    a = h[:, c_m:c_m + c_z]
    b = h[:, c_m + c_z:c_m + 2 * c_z]
    s_single = h[:, c_m + 2 * c_z:]

    m_new0 = m_row0 + jnp.maximum(t + b_m_ref[...], 0.0)           # transition

    # pair helper for this recycle: [a | b/S | ca_prev, |ca|^2, -2ca_prev, 1 | 0]
    pad = PACK_W - 2 * c_z - 8
    hp_out_ref[0] = jnp.concatenate(
        [a, b * (1.0 / n_seq), casq_prev[...], jnp.zeros((n_res, pad), f32)],
        axis=-1)

    # structure head -> packed lane-dense [coords(42) | sigmoid(mask)(14) | 0]
    xm = jnp.dot(s_single.astype(bf16), w_sx_ref[...],
                 preferred_element_type=f32)                       # [N, 128]
    lane = lax.broadcasted_iota(jnp.int32, xm.shape, 1)
    xm = jnp.where((lane >= 3 * NUM_ATOMS) & (lane < 4 * NUM_ATOMS),
                   jax.nn.sigmoid(xm), xm)
    xm = jnp.where(lane < 4 * NUM_ATOMS, xm, 0.0)

    xm_out_ref[0] = xm
    m0_out_ref[0] = m_new0

    # recycled state for the next iteration
    m1_prev[...] = m_new0
    ca = xm[:, 3:6]                                                # pseudo-CA
    sq = jnp.sum(ca * ca, axis=-1, keepdims=True)
    casq_prev[...] = jnp.concatenate([ca, sq, -2.0 * ca, jnp.ones_like(sq)],
                                     axis=-1)


def run_msa_iterations(m0_init, params, num_recycles, n_seq, n_res):
    f32, bf16 = jnp.float32, jnp.bfloat16
    c_m = m0_init.shape[1]
    c_z = params['w_opm_a'].shape[1]
    c_s = params['w_s'].shape[1]
    r1 = num_recycles + 1
    assert 2 * c_z + 8 <= PACK_W and 4 * NUM_ATOMS <= PACK_W

    w_mf = jnp.concatenate(
        [params['w_m'], params['w_opm_a'], params['w_opm_b'], params['w_s']],
        axis=1).astype(bf16)                                # [Cm, Cm+2Cz+Cs]
    w_sx = jnp.concatenate(
        [params['w_x'], params['w_msk'],
         jnp.zeros((c_s, PACK_W - 4 * NUM_ATOMS), f32)], axis=1).astype(bf16)

    inputs = (m0_init, w_mf, params['b_m'], w_sx,
              params['ln_m_g'], params['ln_m_b'])

    def _const2d(arr):
        return pl.BlockSpec(arr.shape, lambda r: (0, 0))

    out_shape = (
        jax.ShapeDtypeStruct((r1, n_res, c_m), f32),     # first-seq MSA rows
        jax.ShapeDtypeStruct((r1, n_res, PACK_W), f32),  # packed coords/mask
        jax.ShapeDtypeStruct((r1, n_res, PACK_W), f32),  # pair helper
    )
    out_specs = (
        pl.BlockSpec((1, n_res, c_m), lambda r: (r, 0, 0)),
        pl.BlockSpec((1, n_res, PACK_W), lambda r: (r, 0, 0)),
        pl.BlockSpec((1, n_res, PACK_W), lambda r: (r, 0, 0)),
    )
    kernel = functools.partial(_msa_recycle_kernel, n_seq=n_seq, c_z=c_z)
    return pl.pallas_call(
        kernel,
        grid=(r1,),
        out_shape=out_shape,
        in_specs=[_const2d(x) for x in inputs],
        out_specs=out_specs,
        scratch_shapes=[pltpu.VMEM((n_res, c_m), f32),   # m1_prev
                        pltpu.VMEM((n_res, 8), f32)],    # prev-CA pack
        compiler_params=pltpu.CompilerParams(
            dimension_semantics=("arbitrary",),
            vmem_limit_bytes=_vmem_limit_bytes()),
    )(*inputs)


# --------------------------------------------------------------------------
# Kernel B: pair path, row-tiled, grid = (row_tiles["parallel"], R+1["arbitrary"])
# --------------------------------------------------------------------------
def _pair_recycle_kernel(
    z0_ref, hpi_ref, hpj_ref, lower_ref, w_dbin_ref,
    w_z_ref, b_z_ref, g_z_ref, be_z_ref,                            # inputs
    z_out_ref,                                                      # output
    z_prev,                                                         # scratch
):
    f32, bf16 = jnp.float32, jnp.bfloat16
    c_z = w_z_ref.shape[0]
    r = pl.program_id(1)

    @pl.when(r == 0)
    def _init():
        z_prev[...] = jnp.zeros_like(z_prev)

    hi = hpi_ref[0]                          # [TI, 128]  (this tile's i rows)
    hj = hpj_ref[0]                          # [N, 128]   (all j rows)
    ti = hi.shape[0]
    n = hj.shape[0]
    nb = w_dbin_ref.shape[0]

    a_i = hi[:, :c_z]                        # [TI, Cz]
    b_j = hj[:, c_z:2 * c_z]                 # [N, Cz]  (already scaled by 1/S)
    rhs_j = hj[:, 2 * c_z:2 * c_z + 4]       # [N, 4]  = [x, y, z, |x|^2]
    lhs_i = hi[:, 2 * c_z + 4:2 * c_z + 8]   # [TI, 4] = [-2x, -2y, -2z, 1]
    sq_i = hi[:, 2 * c_z + 3:2 * c_z + 4]    # [TI, 1]

    # d^2 = |xi|^2 + |xj|^2 - 2 xi.xj via a single [TI,4]x[N,4] MXU pass
    dn = (((1,), (1,)), ((), ()))            # 'ik,jk->ij'
    d2 = jnp.maximum(
        lax.dot_general(lhs_i, rhs_j, dn, preferred_element_type=f32) + sq_i,
        0.0)                                                       # [TI, N]

    # step-function one-hot (lower_0 = -1 => AF bin-0 semantics) with
    # differenced weights: sum_k (d2 > lower_k) * (w_k - w_{k-1}) == one_hot @ w
    oh = (d2[:, :, None] > lower_ref[...][None, :, :]).astype(bf16)  # [TI,N,NB]
    disto = jnp.dot(oh.reshape(ti * n, nb), w_dbin_ref[...],
                    preferred_element_type=f32)                    # [TI*N, Cz]

    # pair recycling + current-iteration outer-product-mean term (s = 0 only;
    # the invariant s >= 1 part is folded into z0 JAX-side)
    zp = _layer_norm(z_prev[...]) * g_z_ref[...] + be_z_ref[...]
    opm = (a_i[:, None, :] * b_j[None, :, :]).reshape(ti * n, c_z)
    z = z0_ref[...] + zp + disto + opm

    # pair transition (residual MLP, bf16 MXU / f32 accumulate)
    z = z + jnp.maximum(
        jnp.dot(z.astype(bf16), w_z_ref[...], preferred_element_type=f32)
        + b_z_ref[...], 0.0)

    z_out_ref[0] = z
    z_prev[...] = z


def _pick_pair_row_tile(n_res, c_z, budget_bytes=2 * 1024 * 1024):
    """i-rows of the [n_res, n_res] pair grid handled per tile."""
    cands = [t for t in range(8, n_res, 8) if n_res % t == 0] + [n_res]
    fitting = [t for t in cands if t * n_res * c_z * 4 <= budget_bytes]
    return max(fitting) if fitting else min(cands)


def run_pair_iterations(z_init, helper_all, params, num_recycles, n_res):
    f32, bf16 = jnp.float32, jnp.bfloat16
    nn, c_z = z_init.shape
    r1 = num_recycles + 1
    nb = params['w_dbin'].shape[0]

    # squared lower bin boundaries; bin 0 catches everything below DIST_MIN
    step = (DIST_MAX - DIST_MIN) / (NUM_DIST_BINS - 1)
    lower = (DIST_MIN + np.arange(NUM_DIST_BINS, dtype=np.float64) * step) ** 2
    lower[0] = -1.0
    dist_lower = jnp.asarray(lower[None, :], f32)
    w_dbin = params['w_dbin']
    w_dbin_diff = jnp.concatenate([w_dbin[:1], w_dbin[1:] - w_dbin[:-1]],
                                  axis=0).astype(bf16)

    tile_i = _pick_pair_row_tile(n_res, c_z)
    n_tiles = n_res // tile_i
    rows = tile_i * n_res

    in_specs = [
        pl.BlockSpec((rows, c_z), lambda t, r: (t, 0)),             # z_init tile
        pl.BlockSpec((1, tile_i, PACK_W), lambda t, r: (r, t, 0)),  # helper (i)
        pl.BlockSpec((1, n_res, PACK_W), lambda t, r: (r, 0, 0)),   # helper (j)
        pl.BlockSpec((1, nb), lambda t, r: (0, 0)),                 # bin bounds
        pl.BlockSpec((nb, c_z), lambda t, r: (0, 0)),               # w_dbin_diff
        pl.BlockSpec((c_z, c_z), lambda t, r: (0, 0)),              # w_z
        pl.BlockSpec((1, c_z), lambda t, r: (0, 0)),                # b_z
        pl.BlockSpec((1, c_z), lambda t, r: (0, 0)),                # ln_z_g
        pl.BlockSpec((1, c_z), lambda t, r: (0, 0)),                # ln_z_b
    ]
    return pl.pallas_call(
        _pair_recycle_kernel,
        grid=(n_tiles, r1),
        out_shape=jax.ShapeDtypeStruct((r1, nn, c_z), f32),
        in_specs=in_specs,
        out_specs=pl.BlockSpec((1, rows, c_z), lambda t, r: (r, t, 0)),
        scratch_shapes=[pltpu.VMEM((rows, c_z), f32)],              # z_prev tile
        compiler_params=pltpu.CompilerParams(
            dimension_semantics=("parallel", "arbitrary"),
            vmem_limit_bytes=_vmem_limit_bytes()),
    )(z_init, helper_all, helper_all, dist_lower, w_dbin_diff,
      params['w_z'].astype(bf16), params['b_z'],
      params['ln_z_g'], params['ln_z_b'])


# --------------------------------------------------------------------------
# pTM head: parallel row-tiled softmax over bins, per-block max, JAX-side max
# --------------------------------------------------------------------------
def _tm_score_kernel(z_ref, w_tm_ref, f_ref, ptm_ref, *, n_res):
    f32 = jnp.float32
    logits = jnp.dot(z_ref[...].astype(jnp.bfloat16), w_tm_ref[...],
                     preferred_element_type=f32)                   # [rows, NBt]
    logits = logits - jnp.max(logits, axis=-1, keepdims=True)
    p = jnp.exp(logits)
    p = p * pl.reciprocal(jnp.sum(p, axis=-1, keepdims=True), approx=True)
    rows, nbt = logits.shape
    tile_i = rows // n_res
    p3 = p.reshape(tile_i, n_res, nbt)
    tm_pair = jnp.sum(p3 * f_ref[...][None, :, :], axis=-1)        # [tile_i, N]
    tm_i = jnp.mean(tm_pair, axis=-1, keepdims=True)               # [tile_i, 1]
    ptm_ref[0] = jnp.max(tm_i, axis=0, keepdims=True)              # block max


def _pick_tm_row_tile(n_res, target_rows=16384):
    cands = [t for t in range(1, n_res + 1)
             if n_res % t == 0 and (t * n_res) % 8 == 0]
    if not cands:
        return n_res                              # single full block
    fitting = [t for t in cands if t * n_res <= target_rows]
    return max(fitting) if fitting else min(cands)


def run_tm_score(z2, w_tm, n_res):
    # TODO(synk): simplified 16-bin pTM head vs. the reference 64-bin
    # TMScoreHead; kept as a declared approximation.
    nn, c_z = z2.shape
    nbt = w_tm.shape[1]
    d0 = 1.24 * (max(n_res, 19) - 15) ** (1.0 / 3.0) - 1.8
    edges = np.linspace(0.0, 31.0, nbt + 1)
    centers = (edges[:-1] + edges[1:]) / 2.0
    f = jnp.asarray((1.0 / (1.0 + (centers / d0) ** 2))[None, :], jnp.float32)

    tile_i = _pick_tm_row_tile(n_res)
    rows = tile_i * n_res
    n_blocks = nn // rows
    per_block = pl.pallas_call(
        functools.partial(_tm_score_kernel, n_res=n_res),
        grid=(n_blocks,),
        out_shape=jax.ShapeDtypeStruct((n_blocks, 1, 1), jnp.float32),
        in_specs=[pl.BlockSpec((rows, c_z), lambda i: (i, 0)),
                  pl.BlockSpec((c_z, nbt), lambda i: (0, 0)),
                  pl.BlockSpec((1, nbt), lambda i: (0, 0))],
        out_specs=pl.BlockSpec((1, 1, 1), lambda i: (i, 0, 0)),
        compiler_params=pltpu.CompilerParams(
            dimension_semantics=("parallel",),
            vmem_limit_bytes=_vmem_limit_bytes()),
    )(z2, w_tm.astype(jnp.bfloat16), f)
    return jnp.max(per_block)


# --------------------------------------------------------------------------
# Parameters and wrapper
# --------------------------------------------------------------------------
def init_params(key, c_m=32, c_z=32, c_s=32):
    ks = jax.random.split(key, 12)

    def w(k, shape):
        return (jax.random.normal(k, shape, jnp.float32)
                / np.sqrt(shape[0])).astype(jnp.float32)

    return {
        'w_msa_emb': w(ks[0], (MSA_FEAT_DIM, c_m)),
        'w_pair_emb': w(ks[1], (RELPOS_BINS, c_z)),
        'w_dbin': w(ks[2], (NUM_DIST_BINS, c_z)),
        'w_m': w(ks[3], (c_m, c_m)),
        'b_m': jnp.zeros((1, c_m), jnp.float32),
        'w_opm_a': w(ks[4], (c_m, c_z)),
        'w_opm_b': w(ks[5], (c_m, c_z)),
        'w_z': w(ks[6], (c_z, c_z)),
        'b_z': jnp.zeros((1, c_z), jnp.float32),
        'w_s': w(ks[7], (c_m, c_s)),
        'w_x': w(ks[8], (c_s, NUM_ATOMS * 3)),
        'w_msk': w(ks[9], (c_s, NUM_ATOMS)),
        'w_tm': w(ks[10], (c_z, NUM_TM_BINS)),
        # learned LayerNorm scale/bias for the recycling embedder
        'ln_m_g': jnp.ones((1, c_m), jnp.float32),
        'ln_m_b': jnp.zeros((1, c_m), jnp.float32),
        'ln_z_g': jnp.ones((1, c_z), jnp.float32),
        'ln_z_b': jnp.zeros((1, c_z), jnp.float32),
    }


def psp_featurizer_forward(msa, deletion_matrix, params, num_recycles):
    """Mirrors PspFeaturizer.forward: returns (result_dict, ptm)."""
    # TODO(synk): full data_transform featurization (MSA clustering, template
    # placeholders), the random recycle-dim permutation, and the AtomMapper
    # n37->n14 remap have no clean Pallas equivalent; a one-hot embedder is
    # used and n14 atoms are emitted directly.
    n_seq, n_res = msa.shape
    c_m = params['w_msa_emb'].shape[1]
    c_z = params['w_pair_emb'].shape[1]
    f32 = jnp.float32
    r1 = num_recycles + 1

    msa_oh = jax.nn.one_hot(msa, NUM_AA_TYPES, dtype=f32)
    msa_feat2 = jnp.concatenate(
        [msa_oh, deletion_matrix[..., None].astype(f32)], axis=-1
    ).reshape(n_seq * n_res, MSA_FEAT_DIM)

    rel = jnp.clip(jnp.arange(n_res)[:, None] - jnp.arange(n_res)[None, :],
                   -32, 32) + 32
    relpos2 = jax.nn.one_hot(rel, RELPOS_BINS, dtype=f32).reshape(
        n_res * n_res, RELPOS_BINS)

    # iteration-invariant embeddings (computed once)
    m_init = jnp.dot(msa_feat2, params['w_msa_emb'])          # [S*N, Cm]
    z_init = jnp.dot(relpos2, params['w_pair_emb'])           # [N*N, Cz]
    m0_init = m_init[:n_res]

    # hoist recycle-invariant MSA rows (s >= 1): their transition output and
    # their outer-product-mean contribution are identical in every iteration.
    m_rest_new = None
    if n_seq > 1:
        m_rest = m_init[n_res:]
        m_rest_new = m_rest + jax.nn.relu(
            jnp.dot(m_rest, params['w_m']) + params['b_m'])
        a_rest = jnp.dot(m_rest, params['w_opm_a']).reshape(n_seq - 1, n_res, c_z)
        b_rest = jnp.dot(m_rest, params['w_opm_b']).reshape(n_seq - 1, n_res, c_z)
        opm_inv = jnp.einsum('sic,sjc->ijc', a_rest, b_rest) / n_seq
        z_init = z_init + opm_inv.reshape(n_res * n_res, c_z)

    # kernel A: MSA / structure path fused over recycles
    m0_all, xm_all, helper_all = run_msa_iterations(
        m0_init, params, num_recycles, n_seq, n_res)

    # kernel B: pair path, row-tiled, fused over recycles per tile
    z_all = run_pair_iterations(z_init, helper_all, params, num_recycles, n_res)

    mfea0 = m0_all.reshape(r1, 1, n_res, c_m)
    if m_rest_new is not None:
        mrest_b = jnp.broadcast_to(
            m_rest_new.reshape(1, n_seq - 1, n_res, c_m),
            (r1, n_seq - 1, n_res, c_m))
        mfea = jnp.concatenate([mfea0, mrest_b], axis=1)
    else:
        mfea = mfea0

    result = {
        'mfea': mfea,
        'pfea': z_all.reshape(r1, n_res, n_res, c_z),
        'cord': xm_all[..., :NUM_ATOMS * 3].reshape(r1, n_res, NUM_ATOMS, 3),
        'cmsk': xm_all[..., NUM_ATOMS * 3:NUM_ATOMS * 4],
    }
    ptm = run_tm_score(z_all[-1], params['w_tm'], n_res)
    return result, ptm


if __name__ == "__main__":
    key = jax.random.PRNGKey(0)
    k_msa, k_del, k_param = jax.random.split(key, 3)

    n_seq, n_res = 8, 16
    num_recycles = 2

    msa = jax.random.randint(k_msa, (n_seq, n_res), 0, NUM_AA_TYPES,
                             dtype=jnp.int32)
    deletion_matrix = (jax.random.uniform(k_del, (n_seq, n_res),
                                          dtype=jnp.float32) * 3.0)
    params = init_params(k_param, c_m=32, c_z=32, c_s=32)

    result, ptm = psp_featurizer_forward(msa, deletion_matrix, params,
                                         num_recycles)
    jax.block_until_ready(result)
    jax.block_until_ready(ptm)

    assert result['mfea'].shape == (num_recycles + 1, n_seq, n_res, 32)
    assert result['pfea'].shape == (num_recycles + 1, n_res, n_res, 32)
    assert result['cord'].shape == (num_recycles + 1, n_res, NUM_ATOMS, 3)
    assert result['cmsk'].shape == (num_recycles + 1, n_res, NUM_ATOMS)
    assert bool(jnp.all(jnp.isfinite(result['mfea'])))
    assert bool(jnp.all(jnp.isfinite(result['pfea'])))
    assert bool(jnp.all(jnp.isfinite(result['cord'])))
    assert bool(jnp.isfinite(ptm))

    print("KERNEL_OK")
</pallas_src>

<mosaic_0001>
module attributes {stable_mosaic.version = 11 : i64} {
  func.func @_msa_recycle_kernel(%arg0: i32, %arg1: memref<16x32xf32, #tpu.memory_space<vmem>>, %arg2: memref<32x128xbf16, #tpu.memory_space<vmem>>, %arg3: memref<1x32xf32, #tpu.memory_space<vmem>>, %arg4: memref<32x128xbf16, #tpu.memory_space<vmem>>, %arg5: memref<1x32xf32, #tpu.memory_space<vmem>>, %arg6: memref<1x32xf32, #tpu.memory_space<vmem>>, %arg7: memref<1x16x32xf32, #tpu.memory_space<vmem>>, %arg8: memref<1x16x128xf32, #tpu.memory_space<vmem>>, %arg9: memref<1x16x128xf32, #tpu.memory_space<vmem>>, %arg10: memref<16x32xf32, #tpu.memory_space<vmem>>, %arg11: memref<16x8xf32, #tpu.memory_space<vmem>>) attributes {dimension_semantics = [#tpu.dimension_semantics<arbitrary>], iteration_bounds = array<i64: 3>, scalar_prefetch = 0 : i64, scratch_operands = 2 : i64, tpu.core_type = #tpu.core_type<tc>, window_params = [{pipeline_mode = #tpu.pipeline_mode<synchronous>, transform_indices = @transform_0, window_bounds = array<i64: 16, 32>}, {pipeline_mode = #tpu.pipeline_mode<synchronous>, transform_indices = @transform_1, window_bounds = array<i64: 32, 128>}, {pipeline_mode = #tpu.pipeline_mode<synchronous>, transform_indices = @transform_2, window_bounds = array<i64: 1, 32>}, {pipeline_mode = #tpu.pipeline_mode<synchronous>, transform_indices = @transform_3, window_bounds = array<i64: 32, 128>}, {pipeline_mode = #tpu.pipeline_mode<synchronous>, transform_indices = @transform_4, window_bounds = array<i64: 1, 32>}, {pipeline_mode = #tpu.pipeline_mode<synchronous>, transform_indices = @transform_5, window_bounds = array<i64: 1, 32>}, {transform_indices = @transform_6, window_bounds = array<i64: 1, 16, 32>}, {transform_indices = @transform_7, window_bounds = array<i64: 1, 16, 128>}, {transform_indices = @transform_8, window_bounds = array<i64: 1, 16, 128>}]} {
    %c0_i32 = arith.constant 0 : i32
    %0 = arith.cmpi eq, %arg0, %c0_i32 : i32
    %1 = arith.extui %0 : i1 to i32
    %c0_i32_0 = arith.constant 0 : i32
    %2 = arith.cmpi ne, %1, %c0_i32_0 : i32
    scf.if %2 {
      %cst_44 = arith.constant 0.000000e+00 : f32
      %86 = vector.broadcast %cst_44 : f32 to vector<16x32xf32>
      %c0_45 = arith.constant 0 : index
      %c0_46 = arith.constant 0 : index
      %87 = vector.load %arg10[%c0_45, %c0_46] : memref<16x32xf32, #tpu.memory_space<vmem>>, vector<16x32xf32>
      tpu.vector_store %arg10[%c0_45, %c0_46], %86 {strides = array<i32>} : memref<16x32xf32, #tpu.memory_space<vmem>>, vector<16x32xf32>,
      %cst_47 = arith.constant 0.000000e+00 : f32
      %88 = vector.broadcast %cst_47 : f32 to vector<16x8xf32>
      %c0_48 = arith.constant 0 : index
      %c0_49 = arith.constant 0 : index
      %89 = vector.load %arg11[%c0_48, %c0_49] : memref<16x8xf32, #tpu.memory_space<vmem>>, vector<16x8xf32>
      tpu.vector_store %arg11[%c0_48, %c0_49], %88 {strides = array<i32>} : memref<16x8xf32, #tpu.memory_space<vmem>>, vector<16x8xf32>,
    } else {
    }
    %c0 = arith.constant 0 : index
    %c0_1 = arith.constant 0 : index
    %3 = vector.load %arg10[%c0, %c0_1] : memref<16x32xf32, #tpu.memory_space<vmem>>, vector<16x32xf32>
    %cst = arith.constant dense<0.000000e+00> : vector<16xf32>
    %4 = vector.multi_reduction <add>, %3, %cst [1] : vector<16x32xf32> to vector<16xf32>
    %5 = vector.shape_cast %4 : vector<16xf32> to vector<16x1xf32>
    %cst_2 = arith.constant 3.200000e+01 : f32
    %6 = vector.broadcast %cst_2 : f32 to vector<16x1xf32>
    %7 = arith.divf %5, %6 : vector<16x1xf32>
    %8 = vector.broadcast %7 : vector<16x1xf32> to vector<16x32xf32>
    %9 = arith.subf %3, %8 : vector<16x32xf32>
    %10 = arith.mulf %9, %9 : vector<16x32xf32>
    %cst_3 = arith.constant dense<0.000000e+00> : vector<16xf32>
    %11 = vector.multi_reduction <add>, %10, %cst_3 [1] : vector<16x32xf32> to vector<16xf32>
    %12 = vector.shape_cast %11 : vector<16xf32> to vector<16x1xf32>
    %cst_4 = arith.constant 3.200000e+01 : f32
    %13 = vector.broadcast %cst_4 : f32 to vector<16x1xf32>
    %14 = arith.divf %12, %13 : vector<16x1xf32>
    %15 = vector.broadcast %7 : vector<16x1xf32> to vector<16x32xf32>
    %16 = arith.subf %3, %15 : vector<16x32xf32>
    %cst_5 = arith.constant 9.99999974E-6 : f32
    %17 = vector.broadcast %cst_5 : f32 to vector<16x1xf32>
    %18 = arith.addf %14, %17 : vector<16x1xf32>
    %19 = math.rsqrt %18 : vector<16x1xf32>
    %20 = vector.broadcast %19 : vector<16x1xf32> to vector<16x32xf32>
    %21 = arith.mulf %16, %20 : vector<16x32xf32>
    %c0_6 = arith.constant 0 : index
    %c0_7 = arith.constant 0 : index
    %22 = vector.load %arg5[%c0_6, %c0_7] : memref<1x32xf32, #tpu.memory_space<vmem>>, vector<1x32xf32>
    %23 = vector.broadcast %22 : vector<1x32xf32> to vector<16x32xf32>
    %24 = arith.mulf %21, %23 : vector<16x32xf32>
    %c0_8 = arith.constant 0 : index
    %c0_9 = arith.constant 0 : index
    %25 = vector.load %arg6[%c0_8, %c0_9] : memref<1x32xf32, #tpu.memory_space<vmem>>, vector<1x32xf32>
    %26 = vector.broadcast %25 : vector<1x32xf32> to vector<16x32xf32>
    %27 = arith.addf %24, %26 : vector<16x32xf32>
    %c0_10 = arith.constant 0 : index
    %c0_11 = arith.constant 0 : index
    %28 = vector.load %arg1[%c0_10, %c0_11] : memref<16x32xf32, #tpu.memory_space<vmem>>, vector<16x32xf32>
    %29 = arith.addf %28, %27 : vector<16x32xf32>
    %30 = arith.truncf %29 : vector<16x32xf32> to vector<16x32xbf16>
    %c0_12 = arith.constant 0 : index
    %c0_13 = arith.constant 0 : index
    %31 = vector.load %arg2[%c0_12, %c0_13] : memref<32x128xbf16, #tpu.memory_space<vmem>>, vector<32x128xbf16>
    %cst_14 = arith.constant dense<0.000000e+00> : vector<16x128xf32>
    %32 = tpu.matmul %30, %31, %cst_14 {dimension_numbers = #tpu.dot_dimension_numbers<[1], [0], [0], [1], [0, 0, 1, 1], [], []>} : vector<16x32xbf16>, vector<32x128xbf16>, vector<16x128xf32> -> vector<16x128xf32>
    %33 = vector.extract_strided_slice %32 {offsets = [0, 0], sizes = [16, 32], strides = [1, 1]} : vector<16x128xf32> to vector<16x32xf32>
    %34 = vector.extract_strided_slice %32 {offsets = [0, 32], sizes = [16, 32], strides = [1, 1]} : vector<16x128xf32> to vector<16x32xf32>
    %35 = vector.extract_strided_slice %32 {offsets = [0, 64], sizes = [16, 32], strides = [1, 1]} : vector<16x128xf32> to vector<16x32xf32>
    %36 = vector.extract_strided_slice %32 {offsets = [0, 96], sizes = [16, 32], strides = [1, 1]} : vector<16x128xf32> to vector<16x32xf32>
    %c0_15 = arith.constant 0 : index
    %c0_16 = arith.constant 0 : index
    %37 = vector.load %arg3[%c0_15, %c0_16] : memref<1x32xf32, #tpu.memory_space<vmem>>, vector<1x32xf32>
    %38 = vector.broadcast %37 : vector<1x32xf32> to vector<16x32xf32>
    %39 = arith.addf %33, %38 : vector<16x32xf32>
    %cst_17 = arith.constant 0.000000e+00 : f32
    %40 = vector.broadcast %cst_17 : f32 to vector<16x32xf32>
    %41 = arith.maximumf %39, %40 : vector<16x32xf32>
    %42 = arith.addf %29, %41 : vector<16x32xf32>
    %cst_18 = arith.constant 1.250000e-01 : f32
    %43 = vector.broadcast %cst_18 : f32 to vector<16x32xf32>
    %44 = arith.mulf %35, %43 : vector<16x32xf32>
    %c0_19 = arith.constant 0 : index
    %c0_20 = arith.constant 0 : index
    %45 = vector.load %arg11[%c0_19, %c0_20] : memref<16x8xf32, #tpu.memory_space<vmem>>, vector<16x8xf32>
    %cst_21 = arith.constant 0.000000e+00 : f32
    %46 = vector.broadcast %cst_21 : f32 to vector<16x56xf32>
    %47 = tpu.concatenate %34, %44, %45, %46 in 1 : vector<16x32xf32>, vector<16x32xf32>, vector<16x8xf32>, vector<16x56xf32> -> vector<16x128xf32>
    %c0_22 = arith.constant 0 : index
    %c0_23 = arith.constant 0 : index
    %c0_24 = arith.constant 0 : index
    %48 = vector.load %arg9[%c0_22, %c0_23, %c0_24] : memref<1x16x128xf32, #tpu.memory_space<vmem>>, vector<1x16x128xf32>
    %49 = vector.shape_cast %48 : vector<1x16x128xf32> to vector<16x128xf32>
    %50 = vector.shape_cast %47 : vector<16x128xf32> to vector<1x16x128xf32>
    tpu.vector_store %arg9[%c0_22, %c0_23, %c0_24], %50 {strides = array<i32>} : memref<1x16x128xf32, #tpu.memory_space<vmem>>, vector<1x16x128xf32>,
    %51 = arith.truncf %36 : vector<16x32xf32> to vector<16x32xbf16>
    %c0_25 = arith.constant 0 : index
    %c0_26 = arith.constant 0 : index
    %52 = vector.load %arg4[%c0_25, %c0_26] : memref<32x128xbf16, #tpu.memory_space<vmem>>, vector<32x128xbf16>
    %cst_27 = arith.constant dense<0.000000e+00> : vector<16x128xf32>
    %53 = tpu.matmul %51, %52, %cst_27 {dimension_numbers = #tpu.dot_dimension_numbers<[1], [0], [0], [1], [0, 0, 1, 1], [], []>} : vector<16x32xbf16>, vector<32x128xbf16>, vector<16x128xf32> -> vector<16x128xf32>
    %54 = tpu.iota {dimensions = array<i32: 1>} : vector<16x128xi32>
    %c42_i32 = arith.constant 42 : i32
    %55 = vector.broadcast %c42_i32 : i32 to vector<16x128xi32>
    %56 = arith.cmpi sge, %54, %55 : vector<16x128xi32>
    %c56_i32 = arith.constant 56 : i32
    %57 = vector.broadcast %c56_i32 : i32 to vector<16x128xi32>
    %58 = arith.cmpi slt, %54, %57 : vector<16x128xi32>
    %59 = arith.andi %56, %58 : vector<16x128xi1>
    %60 = arith.negf %53 : vector<16x128xf32>
    %61 = math.exp %60 : vector<16x128xf32>
    %cst_28 = arith.constant 1.000000e+00 : f32
    %62 = vector.broadcast %cst_28 : f32 to vector<16x128xf32>
    %63 = arith.addf %62, %61 : vector<16x128xf32>
    %64 = arith.divf %62, %63 : vector<16x128xf32>
    %65 = arith.select %59, %64, %53 : vector<16x128xi1>, vector<16x128xf32>
    %c56_i32_29 = arith.constant 56 : i32
    %66 = vector.broadcast %c56_i32_29 : i32 to vector<16x128xi32>
    %67 = arith.cmpi slt, %54, %66 : vector<16x128xi32>
    %cst_30 = arith.constant 0.000000e+00 : f32
    %68 = vector.broadcast %cst_30 : f32 to vector<16x128xf32>
    %69 = arith.select %67, %65, %68 : vector<16x128xi1>, vector<16x128xf32>
    %c0_31 = arith.constant 0 : index
    %c0_32 = arith.constant 0 : index
    %c0_33 = arith.constant 0 : index
    %70 = vector.load %arg8[%c0_31, %c0_32, %c0_33] : memref<1x16x128xf32, #tpu.memory_space<vmem>>, vector<1x16x128xf32>
    %71 = vector.shape_cast %70 : vector<1x16x128xf32> to vector<16x128xf32>
    %72 = vector.shape_cast %69 : vector<16x128xf32> to vector<1x16x128xf32>
    tpu.vector_store %arg8[%c0_31, %c0_32, %c0_33], %72 {strides = array<i32>} : memref<1x16x128xf32, #tpu.memory_space<vmem>>, vector<1x16x128xf32>,
    %c0_34 = arith.constant 0 : index
    %c0_35 = arith.constant 0 : index
    %c0_36 = arith.constant 0 : index
    %73 = vector.load %arg7[%c0_34, %c0_35, %c0_36] : memref<1x16x32xf32, #tpu.memory_space<vmem>>, vector<1x16x32xf32>
    %74 = vector.shape_cast %73 : vector<1x16x32xf32> to vector<16x32xf32>
    %75 = vector.shape_cast %42 : vector<16x32xf32> to vector<1x16x32xf32>
    tpu.vector_store %arg7[%c0_34, %c0_35, %c0_36], %75 {strides = array<i32>} : memref<1x16x32xf32, #tpu.memory_space<vmem>>, vector<1x16x32xf32>,
    %c0_37 = arith.constant 0 : index
    %c0_38 = arith.constant 0 : index
    %76 = vector.load %arg10[%c0_37, %c0_38] : memref<16x32xf32, #tpu.memory_space<vmem>>, vector<16x32xf32>
    tpu.vector_store %arg10[%c0_37, %c0_38], %42 {strides = array<i32>} : memref<16x32xf32, #tpu.memory_space<vmem>>, vector<16x32xf32>,
    %77 = vector.extract_strided_slice %69 {offsets = [0, 3], sizes = [16, 3], strides = [1, 1]} : vector<16x128xf32> to vector<16x3xf32>
    %78 = arith.mulf %77, %77 : vector<16x3xf32>
    %cst_39 = arith.constant dense<0.000000e+00> : vector<16xf32>
    %79 = vector.multi_reduction <add>, %78, %cst_39 [1] : vector<16x3xf32> to vector<16xf32>
    %80 = vector.shape_cast %79 : vector<16xf32> to vector<16x1xf32>
    %cst_40 = arith.constant -2.000000e+00 : f32
    %81 = vector.broadcast %cst_40 : f32 to vector<16x3xf32>
    %82 = arith.mulf %81, %77 : vector<16x3xf32>
    %cst_41 = arith.constant 1.000000e+00 : f32
    %83 = vector.broadcast %cst_41 : f32 to vector<16x1xf32>
    %84 = tpu.concatenate %77, %80, %82, %83 in 1 : vector<16x3xf32>, vector<16x1xf32>, vector<16x3xf32>, vector<16x1xf32> -> vector<16x8xf32>
    %c0_42 = arith.constant 0 : index
    %c0_43 = arith.constant 0 : index
    %85 = vector.load %arg11[%c0_42, %c0_43] : memref<16x8xf32, #tpu.memory_space<vmem>>, vector<16x8xf32>
    tpu.vector_store %arg11[%c0_42, %c0_43], %84 {strides = array<i32>} : memref<16x8xf32, #tpu.memory_space<vmem>>, vector<16x8xf32>,
    return
  }
  func.func @transform_0(%arg0: i32) -> (i32, i32) {
    %c0_i32 = arith.constant 0 : i32
    %c0_i32_0 = arith.constant 0 : i32
    %c0_i32_1 = arith.constant 0 : i32
    return %c0_i32, %c0_i32_0 : i32, i32
  }
  func.func @transform_1(%arg0: i32) -> (i32, i32) {
    %c0_i32 = arith.constant 0 : i32
    %c0_i32_0 = arith.constant 0 : i32
    %c0_i32_1 = arith.constant 0 : i32
    return %c0_i32, %c0_i32_0 : i32, i32
  }
  func.func @transform_2(%arg0: i32) -> (i32, i32) {
    %c0_i32 = arith.constant 0 : i32
    %c0_i32_0 = arith.constant 0 : i32
    %c0_i32_1 = arith.constant 0 : i32
    return %c0_i32, %c0_i32_0 : i32, i32
  }
  func.func @transform_3(%arg0: i32) -> (i32, i32) {
    %c0_i32 = arith.constant 0 : i32
    %c0_i32_0 = arith.constant 0 : i32
    %c0_i32_1 = arith.constant 0 : i32
    return %c0_i32, %c0_i32_0 : i32, i32
  }
  func.func @transform_4(%arg0: i32) -> (i32, i32) {
    %c0_i32 = arith.constant 0 : i32
    %c0_i32_0 = arith.constant 0 : i32
    %c0_i32_1 = arith.constant 0 : i32
    return %c0_i32, %c0_i32_0 : i32, i32
  }
  func.func @transform_5(%arg0: i32) -> (i32, i32) {
    %c0_i32 = arith.constant 0 : i32
    %c0_i32_0 = arith.constant 0 : i32
    %c0_i32_1 = arith.constant 0 : i32
    return %c0_i32, %c0_i32_0 : i32, i32
  }
  func.func @transform_6(%arg0: i32) -> (i32, i32, i32) {
    %c0_i32 = arith.constant 0 : i32
    %c0_i32_0 = arith.constant 0 : i32
    %c0_i32_1 = arith.constant 0 : i32
    return %arg0, %c0_i32, %c0_i32_0 : i32, i32, i32
  }
  func.func @transform_7(%arg0: i32) -> (i32, i32, i32) {
    %c0_i32 = arith.constant 0 : i32
    %c0_i32_0 = arith.constant 0 : i32
    %c0_i32_1 = arith.constant 0 : i32
    return %arg0, %c0_i32, %c0_i32_0 : i32, i32, i32
  }
  func.func @transform_8(%arg0: i32) -> (i32, i32, i32) {
    %c0_i32 = arith.constant 0 : i32
    %c0_i32_0 = arith.constant 0 : i32
    %c0_i32_1 = arith.constant 0 : i32
    return %arg0, %c0_i32, %c0_i32_0 : i32, i32, i32
  }
}

</mosaic_0001>

<bundles_post_ra>
// kernel: tpu_custom_call.1
= control target key start
LH: loop header
LB: loop body
LE: loop exit
PB: predicated region body
PF: predicated region fallthrough
CT: control target
= control target key end

     0   :  { %s1632_s0 = inlined_call_operand.hbm [shape: f32[16,32], index: 0, kind: input, shape index: {}]   ;;  %s1633_s1 = inlined_call_operand.hbm [shape: bf16[32,128], index: 1, kind: input, shape index: {}]   ;;  %s1634_s2 = inlined_call_operand.vmem [shape: f32[1,32], index: 2, kind: input, shape index: {}]   ;;  %s1635_s3 = inlined_call_operand.hbm [shape: bf16[32,128], index: 3, kind: input, shape index: {}]   ;;  %s1636_s4 = inlined_call_operand.vmem [shape: f32[1,32], index: 4, kind: input, shape index: {}]   ;;  %s1637_s5 = inlined_call_operand.vmem [shape: f32[1,32], index: 5, kind: input, shape index: {}]   ;;  %s1638_s6 = inlined_call_operand.hbm [shape: f32[3,16,32], index: 6, kind: output, shape index: {0}]   ;;  %s1639_s7 = inlined_call_operand.hbm [shape: f32[3,16,128], index: 7, kind: output, shape index: {1}]   ;;  %s1640_s8 = inlined_call_operand.hbm [shape: f32[3,16,128], index: 8, kind: output, shape index: {2}]  }
   0x1   :  { %1650 = sst [smem:[#allocation21_spill]] %s1633_s1 }
   0x2   :  { %14 = vsyncpa [#allocation5], 0 }
   0x3   :  { %15 = vsyncpa [#allocation8], 0 }
   0x4   :  { %16 = vsyncpa [#allocation6], 0 }
   0x5   :  { %18 = vsyncpa [#allocation6 + $0x1], 0 }
   0x6   :  { %19 = vsyncpa [#allocation12], 0 }
   0x7   :  { %21 = vsyncpa [#allocation12 + $0x1], 0  ;;  %s1307_s27 = smov 0   ;;  %s1309_s28 = smov 0  }
   0x8   :  { %s1311_s29 = smov 0   ;;  %s1313_s30 = smov 0  }
   0x9 LB: > { %1651 = sst [smem:[#allocation18_spill]] %s1236_s29  ;;  %s1328_s9 = sadd.s32 4294967295, %s1240_s30   ;;  %s1240_s30 = sphi %s1313_s30, %s1671_s30   ;;  %s1236_s29 = sphi %s1311_s29, %s1673_s29   ;;  %s1232_s28 = sphi %s1309_s28, %s1675_s28   ;;  %s1228_s27 = sphi %s1307_s27, %s1674_s27  }
   0xa   : > { %s1644_s10 = sadd.s32 4294967294, %s1240_s30   ;;  %s1332_s11 = sadd.s32 1, %s1240_s30  }
   0xb   : > { %1652 = sst [smem:[#allocation19_spill]] %s1332_s11  ;;  %s160_s12 = sadd.s32 1, %s1236_s29 }
   0xc   : > { %s157_s13 = ssub.s32 %s1240_s30, %s1332_s11  ;;  %p170_p0 = scmp.ne.s32.totalorder %s1236_s29, %s1232_s28 }
   0xd   : > { %p158_p1 = scmp.eq.s32.totalorder %s157_s13, 0  ;;  %p171_p2 = scmp.eq.s32.totalorder %s1328_s9, 2 }
   0xe   : > { %p176_p3 = scmp.ne.s32.totalorder %s1232_s28, %s1228_s27  ;;  %p177_p4 = scmp.eq.s32.totalorder %s1644_s10, 2 }
   0xf   : > { %s1345_s14 = scalar_select %p158_p1, %s1236_s29, %s160_s12  }
  0x10   : > { %p1347_p5 = por %p171_p2, %p170_p0  ;;  %p1351_p6 = por %p177_p4, %p176_p3 }
  0x11   : > { %1653 = sst [smem:[#allocation20_spill]] %s1345_s14  ;;  %p857_p7 = scmp.ge.s32.totalorder %s1240_s30, 1 }
  0x12   : > { %s1654_s15 = scalar_select %p1347_p5, 1, 0 }
  0x13   : > { %s1655_s16 = scalar_select %p1351_p6, 1, 0 }
  0x14   : > { %p236_p8 = scmp.lt.s32.totalorder %s1240_s30, 4  ;;  %p1641_p10 = scmp.eq.s32.totalorder %s1328_s9, 0 }
  0x15   : > { %s1242_s18 = smov [#allocation7]   ;;  %s1243_s21 = smov [#allocation4]  }
  0x16   : > { %p1359_p11 = pnand %p857_p7, %p236_p8  ;;  %s261_s19 = sshll.u32 %s1242_s18, 4  ;;  %s262_s19 = int_to_ptr.vmem [resolvable:$true] %s261_s19 }
  0x17   : > { %s248_s22 = sshll.u32 %s1243_s21, 4  ;;  %s1658_s1 = sld [smem:[#allocation21_spill]]  ;;  %s1371_s22 = int_to_ptr.vmem [resolvable:$true] %s248_s22 }
  0x18   : > { %s1656_s17 = scalar_select %p1359_p11, 1, 0 }
  0x19   : > { %p934_p12 = pneg %p1359_p11 }
  0x1b   : > { %p1367_p13 = pnand %p1641_p10, %p934_p12 }
  0x1d   : > { %s1026_s25 = scalar_lea.hbm %s1658_s1, 256  ;;  %p1381_p1 = pneg %p1367_p13 }
  0x1e   : > { %p1027_p0 = scmp.ne.s32.totalorder %s1658_s1, %s1026_s25  ;;  %p1033_p4 = scmp.lt.u32.totalorder %s1026_s25, %s1658_s1 }
  0x20   : > { %p1029_p2 = pnand %p1381_p1, %p1027_p0 }
  0x22   : > { %p1030_p3 = pneg %p1029_p2 }
  0x24   : > { %p1035_p7 = pnand %p1033_p4, %p1030_p3 }
  0x26   : > { %1038 = shalt.err (!%p1035_p7)
}
  0x27   : > { %s1039_s23 = scalar_lea.vmem %s262_s19, 256  ;;  %p1047_p10 = scmp.lt.s32.totalorder %s262_s19, %s262_s19 }
  0x28   : > { %p1040_p8 = scmp.ne.s32.totalorder %s262_s19, %s1039_s23  ;;  %p1048_p6 = scmp.lt.s32.totalorder %s1039_s23, %s1039_s23 }
  0x2a   : > { %p1042_p12 = pnand %p1040_p8, %p1381_p1  ;;  %p1049_p5 = por %p1048_p6, %p1047_p10 }
  0x2c   : > { %p1043_p9 = pneg %p1042_p12 }
  0x2e   : > { %p1050_p11 = pnand %p1049_p5, %p1043_p9 }
  0x30   : > { %1053 = shalt.err (!%p1050_p11)
}
  0x31   : > { %s1648_s24 = smov 64   ;;  %s1649_s26 = smov 4  }
  0x32   : > { %940 = dma.hbm_to_vmem [thread:$0]  (!%p1367_p13), %s1658_s1, 256, %s262_s19, [#allocation8], %s1648_s24, %s1648_s24, %s1649_s26  }
  0x33   : > { %s1054_s10 = scalar_lea.hbm %s1632_s0, 256 }
  0x34   : > { %p1055_p5 = scmp.ne.s32.totalorder %s1632_s0, %s1054_s10  ;;  %p1061_p10 = scmp.lt.u32.totalorder %s1054_s10, %s1632_s0 }
  0x36   : > { %p1057_p6 = pnand %p1055_p5, %p1381_p1 }
  0x38   : > { %p1058_p9 = pneg %p1057_p6 }
  0x3a   : > { %p1063_p11 = pnand %p1061_p10, %p1058_p9 }
  0x3c   : > { %1066 = shalt.err (!%p1063_p11)
}
  0x3d   : > { %s1067_s19 = scalar_lea.vmem %s1371_s22, 256  ;;  %p1075_p4 = scmp.lt.s32.totalorder %s1371_s22, %s1371_s22 }
  0x3e   : > { %p1068_p0 = scmp.ne.s32.totalorder %s1371_s22, %s1067_s19  ;;  %p1076_p7 = scmp.lt.s32.totalorder %s1067_s19, %s1067_s19 }
  0x40   : > { %p1070_p2 = pnand %p1068_p0, %p1381_p1  ;;  %p1077_p8 = por %p1076_p7, %p1075_p4 }
  0x42   : > { %p1071_p3 = pneg %p1070_p2 }
  0x44   : > { %p1078_p12 = pnand %p1077_p8, %p1071_p3 }
  0x46   : > { %1081 = shalt.err (!%p1078_p12)
}
  0x47   : > { %s1246_s14 = smov 128   ;;  %s1247_s29 = smov 8  }
  0x48   : > { %937 = dma.hbm_to_vmem [thread:$0]  (!%p1367_p13), %s1632_s0, 256, %s1371_s22, [#allocation5], %s1246_s14, %s1246_s14, %s1247_s29  }
  0x49   : > { %s1248_s25 = smov [#allocation9]   ;;  %s1082_s23 = scalar_lea.hbm %s1635_s3, 256 }
  0x4a   : > { %s277_s12 = sshll.u32 %s1248_s25, 4  ;;  %p1083_p5 = scmp.ne.s32.totalorder %s1635_s3, %s1082_s23  ;;  %s278_s12 = int_to_ptr.vmem [resolvable:$true] %s277_s12 }
  0x4b   : > { %p1089_p10 = scmp.lt.u32.totalorder %s1082_s23, %s1635_s3 }
  0x4c   : > { %p1085_p6 = pnand %p1083_p5, %p1381_p1 }
  0x4e   : > { %p1086_p9 = pneg %p1085_p6 }
  0x50   : > { %p1091_p11 = pnand %p1089_p10, %p1086_p9 }
  0x52   : > { %1094 = shalt.err (!%p1091_p11)
}
  0x53   : > { %s1095_s22 = scalar_lea.vmem %s278_s12, 256  ;;  %p1103_p4 = scmp.lt.s32.totalorder %s278_s12, %s278_s12 }
  0x54   : > { %p1096_p0 = scmp.ne.s32.totalorder %s278_s12, %s1095_s22  ;;  %p1104_p7 = scmp.lt.s32.totalorder %s1095_s22, %s1095_s22 }
  0x56   : > { %p1098_p2 = pnand %p1096_p0, %p1381_p1  ;;  %p1105_p8 = por %p1104_p7, %p1103_p4 }
  0x58   : > { %p1099_p3 = pneg %p1098_p2 }
  0x5a   : > { %p1106_p12 = pnand %p1105_p8, %p1099_p3 }
  0x5c   : > { %1109 = shalt.err (!%p1106_p12)
}
  0x5d   : > { %s1660_s24 = smov 4   ;;  %s1661_s14 = smov 64  }
  0x5e   : > { %943 = dma.hbm_to_vmem [thread:$0]  (!%p1367_p13), %s1635_s3, 256, %s278_s12, [#allocation8], %s1661_s14, %s1661_s14, %s1660_s24  }
  0x5f   : > { %p1662_p5 = scmp.ne.s32.totalorder %s1656_s17, 0 }
  0x60   : > { %p1663_p1 = scmp.eq.s32.totalorder (!%p1662_p5), %s1328_s9, 0 }
  0x61   : > { %299 = sbr.rel (%p1662_p5) target bundleno = 1282 (0x502), region = 44 }
  0x68   : > { %1211 = dma.done.wait (%p1663_p1), [#allocation5], 256   ;;  %p1664_p6 = pmov %p1663_p1 }
  0x69   : > { %p1665_p9 = pmov %p1663_p1 }
  0x6a   : > { %1213 = vsyncadd (%p1664_p6), [#allocation5], 4294967040 }
  0x6b   : > { %1215 = dma.done.wait (%p1665_p9), [#allocation8], 512   ;;  %p1666_p10 = pmov %p1663_p1 }
  0x6c   : > { %s329_s20 = sand.u32 1, %s1232_s28   ;;  %p1667_p13 = scmp.ne.s32.totalorder %s1328_s9, 0 }
  0x6d   : > { %1217 = vsyncadd (%p1666_p10), [#allocation8], 4294966784  ;;  %s865_s13 = sshll.u32 %s329_s20, 4  ;;  %vm351_vm0 = vcmask (!%p1667_p13), 261120   ;;  %vm354_vm1 = vcmask (!%p1667_p13), 64512   ;;  %v1249_v0 = vmov (!%p1667_p13), 0.0  }
  0x6e   : > { %s1457_s29 = scalar_lea.vmem [#allocation10], %s865_s13  ;;  %s1459_s17 = scalar_lea.vmem [#allocation11], %s865_s13  ;;  %352 = vst.msk [vmem:[#allocation2] sm:$0xff] (!%p1667_p13), %vm351_vm0, %v1249_v0  ;;  %353 = vst.msk [vmem:[#allocation2 + $0x8] sm:$0xff] (!%p1667_p13), %vm351_vm0, %v1249_v0 }
  0x6f   : > { %s1461_s10 = scalar_lea.vmem [#allocation13], %s865_s13  ;;  %350 = sbr.rel (%p1667_p13) target bundleno = 118 (0x76), region = 60  ;;  %355 = vst.msk [vmem:[#allocation3] sm:$0xff] (!%p1667_p13), %vm354_vm1, %v1249_v0  ;;  %356 = vst.msk [vmem:[#allocation3 + $0x8] sm:$0xff] (!%p1667_p13), %vm354_vm1, %v1249_v0 }
  0x76 PF: > { %v357_v1 = vld [vmem:[#allocation2] sm:$0xff]  ;;  %vm359_vm2 = vcmask 261120   ;;  %v358_v2 = vld [vmem:[#allocation2 + $0x8] sm:$0xff]  ;;  %v1010_v15 = vld [vmem:[#allocation7] sm:$0xff]   ;;  %v1250_v16 = vmov 0.0   ;;  %vm1251_vm3 = vmmov 0   ;;  %v585_v63 = vlaneseq }
  0x77   : > { %v360_v3 = vsel %vm359_vm2, %v357_v1, 0.0  ;;  %v363_v4 = vsel %vm359_vm2, %v358_v2, 0.0  ;;  %900 = vmatprep.subr.bf16.mxu0 %v1250_v16  ;;  %904 = vmatprep.mubr.msk.bf16.mxu0 %vm1251_vm3, %v1250_v16  ;;  %v1011_v17 = vld [vmem:[#allocation7 + $0x8] sm:$0xff]   ;;  %v869_v25 = vld [vmem:[%s1636_s4] ss:$0 sm:$0xff]  ;;  %v406_v34 = vld [vmem:[#allocation4 + $0x8] sm:$0xff] }
  0x78   : > { %361 = vadd.xlane.f32.xlu0 %v360_v3  ;;  %901 = vmatpush3.bf16.msra.mxu0 %v1010_v15  ;;  %v870_v29 = vld [vmem:[%s1637_s5] ss:$0 sm:$0xff]  ;;  %v1013_v40 = vld [vmem:[#allocation9 + $0x8] sm:$0xff]   ;;  %s1252_s19 = smov 32   ;;  %s1253_s22 = smov 96   ;;  %v486_v55 = vld [vmem:[#allocation3 + $0x8] sm:$0xff] }
  0x79   : > { %908 = vmatprep.subr.bf16.mxu1 %v1250_v16  ;;  %902 = vmatprep.subr.bf16.mxu0 %v1250_v16  ;;  %v405_v33 = vld [vmem:[#allocation4] sm:$0xff]  ;;  %s1254_s24 = smov 64   ;;  %v586_v3 = vand.u32 127, %v585_v63  ;;  %s1255_s14 = smov 125   ;;  %vm622_vm7 = vcmask 23552   ;;  %vm513_vm8 = vcmask 523264  }
  0x7a   : > { %912 = vmatprep.mubr.msk.bf16.mxu1 %vm1251_vm3, %v1250_v16  ;;  %v1012_v39 = vld [vmem:[#allocation9] sm:$0xff]   ;;  %vm516_vm9 = vcmask 588800   ;;  %s1256_s1 = smov 1   ;;  %s663_s26 = sand.u32 1, %s1328_s9  }
  0x7b   : > { %909 = vmatpush3.bf16.msra.mxu1 %v1012_v39  ;;  %v874_v41 = vld [vmem:[%s1634_s2] ss:$0 sm:$0xff]  ;;  %vm587_vm4 = vcmp.ge.s32.totalorder %v586_v3, 42  ;;  %vm588_vm5 = vcmp.lt.s32.totalorder %v586_v3, 56  ;;  %s891_s13 = sshll.u32 %s1328_s9, 8  ;;  %s698_s18 = sshll.u32 %s1459_s17, 4  ;;  %s1508_s18 = int_to_ptr.vmem [resolvable:$true] %s698_s18 }
  0x7c   : > { %364 = vadd.xlane.f32.xlu0 %v363_v4  ;;  %903 = vmatpush3.bf16.msra.mxu0 %v1011_v17  ;;  %vm589_vm6 = vmand %vm587_vm4, %vm588_vm5  ;;  %s1505_s12 = scalar_lea.hbm %s1639_s7, %s891_s13  ;;  %s1521_s11 = scalar_lea.sflag [#allocation12], %s663_s26 }
  0x7d   : > { %910 = vmatprep.subr.bf16.mxu1 %v1250_v16  ;;  %p1668_p0 = scmp.ne.s32.totalorder %s1654_s15, 0  ;;  %s1257_s25 = smov [#allocation11]  }
  0x7e   : > { %s1114_s21 = sshll.u32 %s1257_s25, 4  ;;  %s1115_s21 = int_to_ptr.vmem [resolvable:$false] %s1114_s21 }
  0x7f   : > { %911 = vmatpush3.bf16.msra.mxu1 %v1013_v40  ;;  %s1116_s23 = scalar_lea.vmem %s1115_s21, 512  ;;  %p1117_p4 = scmp.lt.s32.totalorder %s1508_s18, %s1115_s21 }
 0x105   : > { %v362_v5 = vpop.xlane.xlu0 %361 }
 0x106   : > { %v367_v6 = vmul.f32 0.03125, %v362_v5 }
 0x108   : > { %v369_v7 = vsub.f32 %v357_v1, %v367_v6 }
 0x109   : > { %v365_v8 = vpop.xlane.xlu0 %364 }
 0x10a   : > { %v368_v9 = vmul.f32 0.03125, %v365_v8  ;;  %v371_v10 = vmul.f32 %v369_v7, %v369_v7 }
 0x10c   : > { %v370_v11 = vsub.f32 %v358_v2, %v368_v9  ;;  %v373_v12 = vsel %vm359_vm2, %v371_v10, 0.0 }
 0x10d   : > { %374 = vadd.xlane.f32.xlu1 %v373_v12 }
 0x10e   : > { %v372_v13 = vmul.f32 %v370_v11, %v370_v11 }
 0x110   : > { %v376_v14 = vsel %vm359_vm2, %v372_v13, 0.0  ;;  %v485_v13 = vld [vmem:[#allocation3] sm:$0xff] }
 0x111   : > { %377 = vadd.xlane.f32.xlu1 %v376_v14 }
 0x19a   : > { %v375_v18 = vpop.xlane.xlu1 %374 }
 0x19b   : > { %v379_v19 = vmul.f32 0.03125, %v375_v18 }
 0x19d   : > { %v381_v20 = vadd.f32 1e-05, %v379_v19 }
 0x19e   : > { %v378_v21 = vpop.xlane.xlu1 %377 }
 0x19f   : > { %1014 = vrsqrt.f32 %v381_v20  ;;  %v380_v22 = vmul.f32 0.03125, %v378_v21 }
 0x1a1   : > { %v382_v23 = vadd.f32 1e-05, %v380_v22 }
 0x1a3   : > { %1016 = vrsqrt.f32 %v382_v23 }
 0x1a9   : > { %v1015_v24 = vpop.eup %1014 }
 0x1aa   : > { %v385_v26 = vmul.f32 %v1015_v24, %v369_v7 }
 0x1ac   : > { %v394_v27 = vmul.f32 %v869_v25, %v385_v26 }
 0x1ad   : > { %v1017_v28 = vpop.eup %1016 }
 0x1ae   : > { %v386_v30 = vmul.f32 %v1017_v28, %v370_v11  ;;  %v403_v32 = vadd.f32 %v870_v29, %v394_v27 }
 0x1b0   : > { %v395_v31 = vmul.f32 %v869_v25, %v386_v30  ;;  %v407_v36 = vadd.f32 %v405_v33, %v403_v32 }
 0x1b2   : > { %v404_v35 = vadd.f32 %v870_v29, %v395_v31 }
 0x1b4   : > { %v408_v37 = vadd.f32 %v406_v34, %v404_v35 }
 0x1b6   : > { %v409_v38 = vpack.c.bf16 %v408_v37, %v407_v36 }
 0x1b8   : > { %905 = vmatmul.mubr.msk.bf16.vlgmr.msra.gmra.mrb[0].mxu0 %vm359_vm2, %v409_v38 }
 0x28b   : > { %v463_v42 = vpop.f32.mrb[0].mxu0 }
 0x28c   : > { %v477_v43 = vadd.f32 %v874_v41, %v463_v42  ;;  %v906_v44 = vpop.f32.mrb[1].mxu0  ;;  %v483_v12 = vmul.f32 0.125, %v463_v42 }
 0x28d   : > { %v466_v45 = vpop.f32.mrb[2].mxu0 }
 0x28e   : > { %v479_v46 = vmax.f32 %v477_v43, 0.0  ;;  %v478_v47 = vadd.f32 %v874_v41, %v466_v45  ;;  %v907_v48 = vpop.f32.mrb[3].mxu0  ;;  %v521_v49 = vpack.c.bf16 %v466_v45, %v463_v42  ;;  %v484_v53 = vmul.f32 0.125, %v466_v45 }
 0x290   : > { %v481_v50 = vadd.f32 %v479_v46, %v407_v36  ;;  %v480_v51 = vmax.f32 %v478_v47, 0.0  ;;  %527 = vrot.lane.b32.xlu0 %v521_v49, %s1252_s19  ;;  %s1513_s19 = scalar_lea.hbm %s1638_s6, %s891_s13 }
 0x292   : > { %608 = vst.msk [vmem:[%s1457_s29] sm:$0xff] %vm359_vm2, %v481_v50  ;;  %610 = vst.msk [vmem:[#allocation2] sm:$0xff] %vm359_vm2, %v481_v50  ;;  %v482_v52 = vadd.f32 %v480_v51, %v408_v37 }
 0x294   : > { %609 = vst.msk [vmem:[%s1457_s29 + $0x8] sm:$0xff] %vm359_vm2, %v482_v52  ;;  %611 = vst.msk [vmem:[#allocation2 + $0x8] sm:$0xff] %vm359_vm2, %v482_v52  ;;  %489 = vrot.lane.b32.xlu0 %v463_v42, %s1253_s22 }
 0x298   : > { %499 = vrot.lane.b32.xlu0 %v484_v53, %s1253_s22 }
 0x29c   : > { %507 = vrot.lane.b32.xlu0 %v486_v55, %s1254_s24 }
 0x302   : > { %v528_v54 = vpop.permute.xlu0 %527 }
 0x303   : > { %913 = vmatmul.mubr.msk.bf16.vlgmr.msra.gmra.mrb[0].mxu1 %vm359_vm2, %v528_v54 }
 0x306   : > { %v490_v14 = vpop.permute.xlu0 %489 }
 0x30a   : > { %v500_v18 = vpop.permute.xlu0 %499 }
 0x30e   : > { %v508_v21 = vpop.permute.xlu0 %507 }
 0x3d6   : > { %v578_v56 = vpop.f32.mrb[0].mxu1 }
 0x3d7   : > { %v878_v57 = vmul.f32 -1.442695, %v578_v56  ;;  %v914_v58 = vpop.f32.mrb[1].mxu1 }
 0x3d8   : > { %v581_v59 = vpop.f32.mrb[2].mxu1 }
 0x3d9   : > { %1018 = vpow2.f32 %v878_v57  ;;  %v879_v60 = vmul.f32 -1.442695, %v581_v59  ;;  %v915_v61 = vpop.f32.mrb[3].mxu1 }
 0x3db   : > { %1020 = vpow2.f32 %v879_v60 }
 0x3e3   : > { %v1019_v62 = vpop.eup %1018 }
 0x3e4   : > { %v596_v0 = vadd.f32 1.0, %v1019_v62 }
 0x3e5   : > { %v1021_v1 = vpop.eup %1020 }
 0x3e6   : > { %1022 = vrcp.f32 %v596_v0  ;;  %v597_v2 = vadd.f32 1.0, %v1021_v1 }
 0x3e8   : > { %1024 = vrcp.f32 %v597_v2 }
 0x3f0   : > { %v1023_v4 = vpop.eup %1022 }
 0x3f1   : > { %v602_v5 = vsel %vm589_vm6, %v1023_v4, %v578_v56 }
 0x3f2   : > { %v1025_v6 = vpop.eup %1024  ;;  %v604_v7 = vsel %vm588_vm5, %v602_v5, 0.0 }
 0x3f3   : > { %606 = vst [vmem:[%s1459_s17] sm:$0xff] %v604_v7  ;;  %v603_v8 = vsel %vm589_vm6, %v1025_v6, %v581_v59  ;;  %v612_v9 = vmul.f32 %v604_v7, %v604_v7  ;;  %v629_v29 = vmul.f32 -2.0, %v604_v7 }
 0x3f4   : > { %v605_v10 = vsel %vm588_vm5, %v603_v8, 0.0 }
 0x3f5   : > { %607 = vst [vmem:[%s1459_s17 + $0x8] sm:$0xff] %v605_v10  ;;  %616 = vrot.lane.b32.xlu1 %v612_v9, %s1255_s14  ;;  %635 = vrot.lane.b32.xlu0 %v605_v10, %s1255_s14  ;;  %v613_v11 = vmul.f32 %v605_v10, %v605_v10  ;;  %v630_v31 = vmul.f32 -2.0, %v605_v10  ;;  %s1110_s17 = scalar_lea.vmem %s1508_s18, 256 }
 0x3f6   : > { %p1111_p11 = scmp.ne.s32.totalorder %s1508_s18, %s1110_s17  ;;  %p1118_p7 = scmp.lt.s32.totalorder %s1116_s23, %s1110_s17 }
 0x3f8   : > { %p1112_p2 = pnand %p1111_p11, %p1668_p0  ;;  %p1119_p8 = por %p1118_p7, %p1117_p4 }
 0x3f9   : > { %618 = vrot.lane.b32.xlu1 %v613_v11, %s1255_s14 }
 0x3fa   : > { %p1113_p3 = pneg %p1112_p2 }
 0x3fc   : > { %p1120_p12 = pnand %p1119_p8, %p1113_p3 }
 0x3fd   : > { %491 = vrot.lane.b32.xlu1 %v466_v45, %s1253_s22 }
 0x401   : > { %497 = vrot.lane.b32.xlu1 %v483_v12, %s1253_s22  ;;  %s682_s22 = sshll.u32 %s1457_s29, 4  ;;  %s1550_s22 = int_to_ptr.vmem [resolvable:$true] %s682_s22 }
 0x405   : > { %505 = vrot.lane.b32.xlu1 %v485_v13, %s1254_s24 }
 0x409   : > { %633 = vrot.lane.b32.xlu1 %v604_v7, %s1255_s14  ;;  %s1519_s14 = scalar_lea.hbm %s1640_s8, %s891_s13 }
 0x467   : > { %v617_v15 = vpop.permute.xlu1 %616 }
 0x468   : > { %v623_v16 = vsel %vm622_vm7, %v617_v15, 0.0 }
 0x469   : > { %624 = vadd.xlane.f32.xlu1 %v623_v16 }
 0x46b   : > { %v619_v17 = vpop.permute.xlu1 %618 }
 0x46c   : > { %v626_v19 = vsel %vm622_vm7, %v619_v17, 0.0 }
 0x46d   : > { %627 = vadd.xlane.f32.xlu0 %v626_v19 }
 0x46f   : > { %v492_v20 = vpop.permute.xlu1 %491 }
 0x470   : > { %v512_v22 = vsel %vm359_vm2, %v492_v20, %v500_v18 }
 0x471   : > { %v515_v23 = vsel %vm513_vm8, %v512_v22, %v508_v21 }
 0x472   : > { %v518_v24 = vsel %vm516_vm9, %v515_v23, 0.0 }
 0x473   : > { %v498_v25 = vpop.permute.xlu1 %497  ;;  %520 = vst [vmem:[%s1461_s10 + $0x8] sm:$0xff] %v518_v24 }
 0x474   : > { %v511_v26 = vsel %vm359_vm2, %v490_v14, %v498_v25 }
 0x477   : > { %v506_v27 = vpop.permute.xlu1 %505 }
 0x478   : > { %v514_v28 = vsel %vm513_vm8, %v511_v26, %v506_v27 }
 0x479   : > { %v517_v30 = vsel %vm516_vm9, %v514_v28, 0.0 }
 0x47a   : > { %519 = vst [vmem:[%s1461_s10] sm:$0xff] %v517_v30  ;;  %641 = vrot.lane.b32.xlu1 %v629_v29, %s1256_s1 }
 0x483   : > { %643 = vrot.lane.b32.xlu0 %v630_v31, %s1256_s1 }
 0x484   : > { %1123 = shalt.err (!%p1120_p12)
}
 0x485   : > { %s1124_s1 = scalar_lea.hbm %s1505_s12, 256  ;;  %s1128_s9 = scalar_lea.hbm %s1639_s7, 768 }
 0x486   : > { %p1125_p5 = scmp.ne.s32.totalorder %s1505_s12, %s1124_s1  ;;  %p1129_p9 = scmp.lt.u32.totalorder %s1505_s12, %s1639_s7 }
 0x487   : > { %p1130_p10 = scmp.lt.u32.totalorder %s1128_s9, %s1124_s1  ;;  %p1132_p11 = scmp.lt.u32.totalorder %s1124_s1, %s1505_s12 }
 0x488   : > { %p1126_p1 = pnand %p1125_p5, %p1668_p0 }
 0x489   : > { %p1131_p13 = por %p1130_p10, %p1129_p9 }
 0x48a   : > { %p1127_p6 = pneg %p1126_p1 }
 0x48b   : > { %p1133_p2 = por %p1132_p11, %p1131_p13 }
 0x48d   : > { %p1134_p3 = pnand %p1133_p2, %p1127_p6 }
 0x48f   : > { %1137 = shalt.err (!%p1134_p3)
}
 0x490   : > { %s1258_s17 = smov 128   ;;  %s1259_s21 = smov 8  }
 0x491   : > { %929 = dma.vmem_to_hbm [thread:$0]  (%p1668_p0), %s1508_s18, 256, %s1505_s12, %s1521_s11, %s1258_s17, %s1258_s17, %s1259_s21  }
 0x492   : > { %s714_s23 = sshll.u32 %s1461_s10, 4  ;;  %s1555_s1 = scalar_lea.sflag [#allocation6], %s329_s20  ;;  %s1584_s23 = int_to_ptr.vmem [resolvable:$true] %s714_s23 }
 0x493   : > { %s1138_s26 = scalar_lea.vmem %s1550_s22, 256  ;;  %s1260_s13 = smov [#allocation10]  }
 0x494   : > { %p1139_p4 = scmp.ne.s32.totalorder %s1550_s22, %s1138_s26  ;;  %s1142_s9 = sshll.u32 %s1260_s13, 4  ;;  %s1143_s9 = int_to_ptr.vmem [resolvable:$false] %s1142_s9 }
 0x495   : > { %s1144_s24 = scalar_lea.vmem %s1143_s9, 512  ;;  %p1145_p12 = scmp.lt.s32.totalorder %s1550_s22, %s1143_s9 }
 0x496   : > { %p1140_p7 = pnand %p1139_p4, %p1668_p0  ;;  %p1146_p5 = scmp.lt.s32.totalorder %s1144_s24, %s1138_s26 }
 0x498   : > { %p1141_p8 = pneg %p1140_p7  ;;  %p1147_p1 = por %p1146_p5, %p1145_p12 }
 0x49a   : > { %p1148_p6 = pnand %p1147_p1, %p1141_p8 }
 0x49c   : > { %1151 = shalt.err (!%p1148_p6)
}
 0x49d   : > { %s1152_s20 = scalar_lea.hbm %s1513_s19, 256  ;;  %s1156_s18 = scalar_lea.hbm %s1638_s6, 768 }
 0x49e   : > { %p1153_p9 = scmp.ne.s32.totalorder %s1513_s19, %s1152_s20  ;;  %p1157_p11 = scmp.lt.u32.totalorder %s1513_s19, %s1638_s6 }
 0x49f   : > { %p1158_p2 = scmp.lt.u32.totalorder %s1156_s18, %s1152_s20  ;;  %p1160_p4 = scmp.lt.u32.totalorder %s1152_s20, %s1513_s19 }
 0x4a0   : > { %p1154_p10 = pnand %p1153_p9, %p1668_p0 }
 0x4a1   : > { %p1159_p3 = por %p1158_p2, %p1157_p11 }
 0x4a2   : > { %p1155_p13 = pneg %p1154_p10 }
 0x4a3   : > { %p1161_p7 = por %p1160_p4, %p1159_p3 }
 0x4a5   : > { %p1162_p8 = pnand %p1161_p7, %p1155_p13 }
 0x4a7   : > { %1165 = shalt.err (!%p1162_p8)
}
 0x4a8   : > { %928 = dma.vmem_to_hbm [thread:$0]  (%p1668_p0), %s1550_s22, 256, %s1513_s19, %s1555_s1, %s1258_s17, %s1258_s17, %s1259_s21  }
 0x4a9   : > { %s1166_s26 = scalar_lea.vmem %s1584_s23, 256  ;;  %s1261_s9 = smov [#allocation13]  }
 0x4aa   : > { %p1167_p12 = scmp.ne.s32.totalorder %s1584_s23, %s1166_s26  ;;  %s1170_s24 = sshll.u32 %s1261_s9, 4  ;;  %s1171_s24 = int_to_ptr.vmem [resolvable:$false] %s1170_s24 }
 0x4ab   : > { %s1172_s20 = scalar_lea.vmem %s1171_s24, 512  ;;  %p1173_p6 = scmp.lt.s32.totalorder %s1584_s23, %s1171_s24 }
 0x4ac   : > { %p1168_p5 = pnand %p1167_p12, %p1668_p0  ;;  %p1174_p9 = scmp.lt.s32.totalorder %s1172_s20, %s1166_s26 }
 0x4ae   : > { %p1169_p1 = pneg %p1168_p5  ;;  %p1175_p10 = por %p1174_p9, %p1173_p6 }
 0x4b0   : > { %p1176_p13 = pnand %p1175_p10, %p1169_p1 }
 0x4b2   : > { %1179 = shalt.err (!%p1176_p13)
}
 0x4b3   : > { %s1180_s10 = scalar_lea.hbm %s1519_s14, 256  ;;  %s1184_s1 = scalar_lea.hbm %s1640_s8, 768 }
 0x4b4   : > { %p1181_p11 = scmp.ne.s32.totalorder %s1519_s14, %s1180_s10  ;;  %p1185_p4 = scmp.lt.u32.totalorder %s1519_s14, %s1640_s8 }
 0x4b5   : > { %p1186_p7 = scmp.lt.u32.totalorder %s1184_s1, %s1180_s10  ;;  %p1188_p12 = scmp.lt.u32.totalorder %s1180_s10, %s1519_s14 }
 0x4b6   : > { %p1182_p2 = pnand %p1181_p11, %p1668_p0 }
 0x4b7   : > { %p1187_p8 = por %p1186_p7, %p1185_p4 }
 0x4b8   : > { %p1183_p3 = pneg %p1182_p2 }
 0x4b9   : > { %p1189_p5 = por %p1188_p12, %p1187_p8 }
 0x4bb   : > { %p1190_p1 = pnand %p1189_p5, %p1183_p3 }
 0x4bd   : > { %1193 = shalt.err (!%p1190_p1)
}
 0x4be   : > { %930 = dma.vmem_to_hbm [thread:$0]  (%p1668_p0), %s1584_s23, 256, %s1519_s14, %s1521_s11, %s1258_s17, %s1258_s17, %s1259_s21   ;;  %v634_v32 = vpop.permute.xlu1 %633  ;;  %v636_v33 = vpop.permute.xlu0 %635  ;;  %vm649_vm10 = vcmask 31744   ;;  %vm652_vm11 = vcmask 56320   ;;  %vm655_vm12 = vcmask 64512  }
 0x4f6   : > { %v625_v34 = vpop.xlane.xlu1 %624 }
 0x4f7   : > { %v647_v35 = vsel %vm622_vm7, %v634_v32, %v625_v34 }
 0x4fa   : > { %v642_v36 = vpop.permute.xlu1 %641  ;;  %v628_v37 = vpop.xlane.xlu0 %627 }
 0x4fb   : > { %v650_v38 = vsel %vm649_vm10, %v647_v35, %v642_v36  ;;  %v648_v40 = vsel %vm622_vm7, %v636_v33, %v628_v37 }
 0x4fc   : > { %v653_v39 = vsel %vm652_vm11, %v650_v38, 1.0 }
 0x4fd   : > { %656 = vst.msk [vmem:[#allocation3] sm:$0xff] %vm655_vm12, %v653_v39 }
 0x4fe   : > { %v644_v41 = vpop.permute.xlu0 %643 }
 0x4ff   : > { %v651_v42 = vsel %vm649_vm10, %v648_v40, %v644_v41 }
 0x500   : > { %v654_v43 = vsel %vm652_vm11, %v651_v42, 1.0 }
 0x501   : > { %657 = vst.msk [vmem:[#allocation3 + $0x8] sm:$0xff] %vm655_vm12, %v654_v43 }
 0x502 PF: > { %p960_p0 = scmp.ge.s32.totalorder %s1240_s30, 2  ;;  %s729_s15 = sand.u32 1, %s1228_s27  }
 0x503   : > { %p1669_p6 = scmp.ne.s32.totalorder %s1655_s16, 0  ;;  %s730_s14 = scalar_lea.sflag [#allocation6], %s729_s15 }
 0x505   : > { %p945_p9 = pnand %p960_p0, %p1669_p6 }
 0x507   : > { %1219 = dma.done.wait (!%p945_p9), %s730_s14, 256  }
 0x508   : > { %1221 = vsyncadd (!%p945_p9), %s730_s14, 4294967040  ;;  %s1670_s11 = sadd.s32 4294967294, %s1240_s30  }
 0x509   : > { %s738_s17 = sand.u32 1, %s1670_s11  }
 0x50a   : > { %s739_s21 = scalar_lea.sflag [#allocation12], %s738_s17 }
 0x50b   : > { %1223 = dma.done.wait (!%p945_p9), %s739_s21, 512  }
 0x50c   : > { %1225 = vsyncadd (!%p945_p9), %s739_s21, 4294966784  ;;  %s1671_s30 = sld [smem:[#allocation19_spill]]  ;;  %s1672_s23 = sld [smem:[#allocation18_spill]] }
 0x50d   : > { %s1673_s29 = sld [smem:[#allocation20_spill]]  ;;  %s1674_s27 = smov %s1232_s28 }
 0x512   : > { %p24_p10 = scmp.ge.s32.totalorder %s1671_s30, 5   ;;  %s1675_s28 = smov %s1672_s23 }
 0x514   :  { %26 = sbr.rel (!%p24_p10) target bundleno = 9 (0x9), region = 125 }
 0x51b   :  { %753 = vsyncpa [#allocation5], 1 }
 0x51c   :  { %755 = vsyncpa [#allocation5 + $0x1], 1 }
 0x51d   :  { %756 = vsyncpa [#allocation8], 1 }
 0x51e   :  { %757 = vsyncpa [#allocation6], 1 }
 0x51f   :  { %759 = vsyncpa [#allocation6 + $0x1], 1 }
 0x520   :  { %760 = vsyncpa [#allocation12], 1 }
 0x521   :  { %762 = vsyncpa [#allocation12 + $0x1], 1 }

</bundles_post_ra>
